<compile_context>
chip_gen: v5e
topology: v5e:2x2
jax: 0.10.0
libtpu: 0.0.40
codegen_flags: <defaults>
</compile_context>

<pallas_src>
import functools

import jax
import jax.numpy as jnp
from jax import lax
from jax.experimental import pallas as pl
from jax.experimental.pallas import tpu as pltpu


def _round_up(n, m):
    return ((n + m - 1) // m) * m


# ---------------------------------------------------------------------------
# Kernel 1: row-tiled fused Linear (+ optional ReLU):  Y = [relu](X @ W + b)
# ---------------------------------------------------------------------------
def _linear_kernel(x_ref, w_ref, b_ref, o_ref, *, relu):
    y = jnp.dot(x_ref[...], w_ref[...], preferred_element_type=jnp.float32)
    y = y + b_ref[...]
    if relu:
        y = jnp.maximum(y, 0.0)
    o_ref[...] = y.astype(o_ref.dtype)


def pallas_linear(x, w, b, *, relu=False, row_tile=256):
    n, f_in = x.shape
    f_out = w.shape[1]
    tr = min(row_tile, _round_up(n, 8))
    grid = (pl.cdiv(n, tr),)
    return pl.pallas_call(
        functools.partial(_linear_kernel, relu=relu),
        out_shape=jax.ShapeDtypeStruct((n, f_out), jnp.float32),
        grid=grid,
        in_specs=[pl.BlockSpec((tr, f_in), lambda i: (i, 0)),
                  pl.BlockSpec((f_in, f_out), lambda i: (0, 0)),
                  pl.BlockSpec((1, f_out), lambda i: (0, 0))],
        out_specs=pl.BlockSpec((tr, f_out), lambda i: (i, 0)),
        compiler_params=pltpu.CompilerParams(
            dimension_semantics=("parallel",)),
    )(x, w, b)


# ---------------------------------------------------------------------------
# Kernel 2: fused edge network  Y = (relu(E @ W1 + b1)) @ W2 + b2
#   (hidden activations stay in VMEM/vregs per row tile; no HBM round-trip)
# ---------------------------------------------------------------------------
def _edge_network_kernel(e_ref, w1_ref, b1_ref, w2_ref, b2_ref, o_ref):
    h = jnp.dot(e_ref[...], w1_ref[...], preferred_element_type=jnp.float32)
    h = jnp.maximum(h + b1_ref[...], 0.0)
    y = jnp.dot(h, w2_ref[...], preferred_element_type=jnp.float32) + b2_ref[...]
    o_ref[...] = y.astype(o_ref.dtype)


def pallas_edge_network(e, w1, b1, w2, b2, *, row_tile=256):
    n, f_in = e.shape
    f_hid = w1.shape[1]
    f_out = w2.shape[1]
    tr = min(row_tile, _round_up(n, 8))
    grid = (pl.cdiv(n, tr),)
    return pl.pallas_call(
        _edge_network_kernel,
        out_shape=jax.ShapeDtypeStruct((n, f_out), jnp.float32),
        grid=grid,
        in_specs=[pl.BlockSpec((tr, f_in), lambda i: (i, 0)),
                  pl.BlockSpec((f_in, f_hid), lambda i: (0, 0)),
                  pl.BlockSpec((1, f_hid), lambda i: (0, 0)),
                  pl.BlockSpec((f_hid, f_out), lambda i: (0, 0)),
                  pl.BlockSpec((1, f_out), lambda i: (0, 0))],
        out_specs=pl.BlockSpec((tr, f_out), lambda i: (i, 0)),
        compiler_params=pltpu.CompilerParams(
            dimension_semantics=("parallel",)),
    )(e, w1, b1, w2, b2)


# ---------------------------------------------------------------------------
# Kernel 3: num_step_message_passing rounds of NNConv (aggregator='sum') + ReLU
#   grid = (steps, edge_tiles); src/dst indices scalar-prefetched into SMEM;
#   h and the per-step accumulator are resident (V, D) VMEM scratch buffers.
# ---------------------------------------------------------------------------
def _mpnn_kernel(src_ref, dst_ref,               # SMEM scalar-prefetch (E_pad,)
                 h0_ref, wedge_ref, bias_ref,    # VMEM inputs
                 o_ref,                          # (V, D) output
                 h_scr, acc_scr, hsrc_scr,       # VMEM scratch
                 *, edge_tile):
    step = pl.program_id(0)
    tile = pl.program_id(1)
    n_steps = pl.num_programs(0)
    n_tiles = pl.num_programs(1)

    # Load projected node features into the resident state once.
    @pl.when(jnp.logical_and(step == 0, tile == 0))
    def _():
        h_scr[...] = h0_ref[...]

    # Zero the scatter-sum accumulator at the start of every step.
    @pl.when(tile == 0)
    def _():
        acc_scr[...] = jnp.zeros_like(acc_scr)

    base = tile * edge_tile

    # ---- index-based gather: h[src[e]] for the edges in this tile ----
    for i in range(edge_tile):
        hsrc_scr[pl.ds(i, 1), :] = h_scr[pl.ds(src_ref[base + i], 1), :]
    h_src = hsrc_scr[...]                                   # (te, D)

    # ---- per-edge message on the MXU: (te,1,D) @ (te,D,D) -> (te,D) ----
    m = lax.dot_general(
        h_src[:, None, :], wedge_ref[...],
        dimension_numbers=(((2,), (1,)), ((0,), (0,))),
        preferred_element_type=jnp.float32)[:, 0, :]        # (te, D)

    # ---- index-based scatter-sum into the resident accumulator ----
    # TODO(synk): for large edge tiles, replace this serial per-row RMW with a
    # dst-sorted segment reduction to break the read-modify-write chain.
    for i in range(edge_tile):
        row = pl.ds(dst_ref[base + i], 1)
        acc_scr[row, :] = acc_scr[row, :] + m[i:i + 1, :]

    # ---- end of step: bias + ReLU (bias broadcast once per step) ----
    @pl.when(tile == n_tiles - 1)
    def _():
        h_scr[...] = jnp.maximum(acc_scr[...] + bias_ref[...], 0.0)

    # ---- write the final node representations once, at the very end ----
    @pl.when(jnp.logical_and(step == n_steps - 1, tile == n_tiles - 1))
    def _():
        o_ref[...] = h_scr[...].astype(o_ref.dtype)


def pallas_mpnn(src, dst, h0, wedge, bias, *, num_steps, edge_tile):
    v, d = h0.shape
    e_pad = wedge.shape[0]
    assert e_pad % edge_tile == 0
    n_tiles = e_pad // edge_tile
    kernel = functools.partial(_mpnn_kernel, edge_tile=edge_tile)
    return pl.pallas_call(
        kernel,
        out_shape=jax.ShapeDtypeStruct((v, d), jnp.float32),
        grid_spec=pltpu.PrefetchScalarGridSpec(
            num_scalar_prefetch=2,
            grid=(num_steps, n_tiles),
            in_specs=[
                pl.BlockSpec((v, d), lambda s, t, sref, dref: (0, 0)),        # h0
                pl.BlockSpec((edge_tile, d, d),
                             lambda s, t, sref, dref: (t, 0, 0)),             # wedge
                pl.BlockSpec((1, d), lambda s, t, sref, dref: (0, 0)),        # bias
            ],
            out_specs=pl.BlockSpec((v, d), lambda s, t, sref, dref: (0, 0)),
            scratch_shapes=[
                pltpu.VMEM((v, d), jnp.float32),          # resident node state h
                pltpu.VMEM((v, d), jnp.float32),          # per-step accumulator
                pltpu.VMEM((edge_tile, d), jnp.float32),  # gathered h[src] tile
            ]),
        compiler_params=pltpu.CompilerParams(
            # edge-tile axis is a reduction into a shared accumulator -> arbitrary
            dimension_semantics=("arbitrary", "arbitrary"),
            vmem_limit_bytes=32 * 1024 * 1024),
    )(src, dst, h0, wedge, bias)


# ---------------------------------------------------------------------------
# Full forward (glue reshapes / padding in plain JAX)
# ---------------------------------------------------------------------------
def mpnn_wo_gru_forward(params, src, dst, node_feats, edge_feats, num_nodes,
                        *, num_step_message_passing, edge_tile=8):
    # project_node_feats = Linear + ReLU
    h0 = pallas_linear(node_feats, params["proj_w"], params["proj_b"], relu=True)
    d = h0.shape[1]
    # edge_network = Linear -> ReLU -> Linear (fused; per-edge D*D matrices)
    e_flat = pallas_edge_network(edge_feats,
                                 params["edge_w1"], params["edge_b1"],
                                 params["edge_w2"], params["edge_b2"])
    e = edge_feats.shape[0]
    e_pad = _round_up(e, edge_tile)
    # Pad edges to a multiple of the edge tile: padded edges get zero weight
    # matrices (=> zero messages) and src=dst=0, so they contribute nothing.
    wedge = jnp.pad(e_flat, ((0, e_pad - e), (0, 0))).reshape(e_pad, d, d)
    src_p = jnp.pad(src.astype(jnp.int32), (0, e_pad - e))
    dst_p = jnp.pad(dst.astype(jnp.int32), (0, e_pad - e))
    return pallas_mpnn(src_p, dst_p, h0, wedge, params["nnconv_bias"],
                       num_steps=num_step_message_passing, edge_tile=edge_tile)


# ---------------------------------------------------------------------------
# Pure-JAX reference (mirrors the PyTorch / DGL semantics)
# ---------------------------------------------------------------------------
def reference_forward(params, src, dst, node_feats, edge_feats, num_nodes,
                      *, num_step_message_passing):
    hi = jax.lax.Precision.HIGHEST
    h = jax.nn.relu(jnp.dot(node_feats, params["proj_w"], precision=hi)
                    + params["proj_b"])
    e_h = jax.nn.relu(jnp.dot(edge_feats, params["edge_w1"], precision=hi)
                      + params["edge_b1"])
    e_flat = jnp.dot(e_h, params["edge_w2"], precision=hi) + params["edge_b2"]
    d = h.shape[1]
    wedge = e_flat.reshape(-1, d, d)
    for _ in range(num_step_message_passing):
        h_src = h[src]                                         # (E, D)
        m = jnp.einsum("ed,edf->ef", h_src, wedge, precision=hi)
        agg = jax.ops.segment_sum(m, dst, num_segments=num_nodes)
        h = jax.nn.relu(agg + params["nnconv_bias"])
    return h


# ---------------------------------------------------------------------------
# Deterministic parameter init (PyTorch Linear-style uniform(+-1/sqrt(fan_in)))
# ---------------------------------------------------------------------------
def init_params(key, node_in, node_out, edge_in, edge_hidden):
    ks = jax.random.split(key, 7)

    def lin(kw, kb, fan_in, fan_out, scale=1.0):
        bound = scale / jnp.sqrt(jnp.float32(fan_in))
        w = jax.random.uniform(kw, (fan_in, fan_out), jnp.float32, -bound, bound)
        b = jax.random.uniform(kb, (1, fan_out), jnp.float32, -bound, bound)
        return w, b

    proj_w, proj_b = lin(ks[0], ks[1], node_in, node_out)
    edge_w1, edge_b1 = lin(ks[2], ks[3], edge_in, edge_hidden)
    # final edge layer scaled down to keep 6 message-passing steps numerically tame
    edge_w2, edge_b2 = lin(ks[4], ks[5], edge_hidden, node_out * node_out,
                           scale=0.01)
    nnconv_bias = jax.random.uniform(
        ks[6], (1, node_out), jnp.float32,
        -1.0 / jnp.sqrt(jnp.float32(node_out)),
        1.0 / jnp.sqrt(jnp.float32(node_out)))
    return dict(proj_w=proj_w, proj_b=proj_b,
                edge_w1=edge_w1, edge_b1=edge_b1,
                edge_w2=edge_w2, edge_b2=edge_b2,
                nnconv_bias=nnconv_bias)


if __name__ == "__main__":
    # small shapes consistent with the module's forward signature
    V, E = 8, 16                   # nodes, edges
    node_in_feats = 16
    node_out_feats = 64            # module default
    edge_in_feats = 16
    edge_hidden_feats = 32
    num_step_message_passing = 6

    key = jax.random.PRNGKey(0)
    k_param, k_node, k_edge, k_src, k_dst = jax.random.split(key, 5)

    params = init_params(k_param, node_in_feats, node_out_feats,
                         edge_in_feats, edge_hidden_feats)

    node_feats = jax.random.normal(k_node, (V, node_in_feats), jnp.float32)
    edge_feats = jax.random.normal(k_edge, (E, edge_in_feats), jnp.float32)
    src = jax.random.randint(k_src, (E,), 0, V)
    dst = jax.random.randint(k_dst, (E,), 0, V)

    out = mpnn_wo_gru_forward(
        params, src, dst, node_feats, edge_feats, V,
        num_step_message_passing=num_step_message_passing, edge_tile=8)
    out = jax.block_until_ready(out)

    ref = reference_forward(
        params, src, dst, node_feats, edge_feats, V,
        num_step_message_passing=num_step_message_passing)
    ref = jax.block_until_ready(ref)

    assert out.shape == (V, node_out_feats)
    assert jnp.allclose(out, ref, rtol=1e-2, atol=1e-2), (
        f"max abs diff {jnp.max(jnp.abs(out - ref))}")
    print("KERNEL_OK")
</pallas_src>

<mosaic_0001>
module attributes {stable_mosaic.version = 11 : i64} {
  func.func @_linear_kernel(%arg0: i32, %arg1: memref<8x16xf32, #tpu.memory_space<vmem>>, %arg2: memref<16x64xf32, #tpu.memory_space<vmem>>, %arg3: memref<1x64xf32, #tpu.memory_space<vmem>>, %arg4: memref<8x64xf32, #tpu.memory_space<vmem>>) attributes {dimension_semantics = [#tpu.dimension_semantics<parallel>], iteration_bounds = array<i64: 1>, scalar_prefetch = 0 : i64, scratch_operands = 0 : i64, tpu.core_type = #tpu.core_type<tc>, window_params = [{transform_indices = @transform_0, window_bounds = array<i64: 8, 16>}, {pipeline_mode = #tpu.pipeline_mode<synchronous>, transform_indices = @transform_1, window_bounds = array<i64: 16, 64>}, {pipeline_mode = #tpu.pipeline_mode<synchronous>, transform_indices = @transform_2, window_bounds = array<i64: 1, 64>}, {transform_indices = @transform_3, window_bounds = array<i64: 8, 64>}]} {
    %c0 = arith.constant 0 : index
    %c0_0 = arith.constant 0 : index
    %0 = vector.load %arg1[%c0, %c0_0] : memref<8x16xf32, #tpu.memory_space<vmem>>, vector<8x16xf32>
    %c0_1 = arith.constant 0 : index
    %c0_2 = arith.constant 0 : index
    %1 = vector.load %arg2[%c0_1, %c0_2] : memref<16x64xf32, #tpu.memory_space<vmem>>, vector<16x64xf32>
    %cst = arith.constant dense<0.000000e+00> : vector<8x64xf32>
    %2 = tpu.matmul %0, %1, %cst {dimension_numbers = #tpu.dot_dimension_numbers<[1], [0], [0], [1], [0, 0, 1, 1], [], []>} : vector<8x16xf32>, vector<16x64xf32>, vector<8x64xf32> -> vector<8x64xf32>
    %c0_3 = arith.constant 0 : index
    %c0_4 = arith.constant 0 : index
    %3 = vector.load %arg3[%c0_3, %c0_4] : memref<1x64xf32, #tpu.memory_space<vmem>>, vector<1x64xf32>
    %4 = vector.broadcast %3 : vector<1x64xf32> to vector<8x64xf32>
    %5 = arith.addf %2, %4 : vector<8x64xf32>
    %cst_5 = arith.constant 0.000000e+00 : f32
    %6 = vector.broadcast %cst_5 : f32 to vector<8x64xf32>
    %7 = arith.maximumf %5, %6 : vector<8x64xf32>
    %c0_6 = arith.constant 0 : index
    %c0_7 = arith.constant 0 : index
    %8 = vector.load %arg4[%c0_6, %c0_7] : memref<8x64xf32, #tpu.memory_space<vmem>>, vector<8x64xf32>
    tpu.vector_store %arg4[%c0_6, %c0_7], %7 {strides = array<i32>} : memref<8x64xf32, #tpu.memory_space<vmem>>, vector<8x64xf32>,
    return
  }
  func.func @transform_0(%arg0: i32) -> (i32, i32) {
    %c0_i32 = arith.constant 0 : i32
    %c0_i32_0 = arith.constant 0 : i32
    return %arg0, %c0_i32 : i32, i32
  }
  func.func @transform_1(%arg0: i32) -> (i32, i32) {
    %c0_i32 = arith.constant 0 : i32
    %c0_i32_0 = arith.constant 0 : i32
    %c0_i32_1 = arith.constant 0 : i32
    return %c0_i32, %c0_i32_0 : i32, i32
  }
  func.func @transform_2(%arg0: i32) -> (i32, i32) {
    %c0_i32 = arith.constant 0 : i32
    %c0_i32_0 = arith.constant 0 : i32
    %c0_i32_1 = arith.constant 0 : i32
    return %c0_i32, %c0_i32_0 : i32, i32
  }
  func.func @transform_3(%arg0: i32) -> (i32, i32) {
    %c0_i32 = arith.constant 0 : i32
    %c0_i32_0 = arith.constant 0 : i32
    return %arg0, %c0_i32 : i32, i32
  }
}

</mosaic_0001>

<bundles_post_ra>
// kernel: tpu_custom_call.1
= control target key start
LH: loop header
LB: loop body
LE: loop exit
PB: predicated region body
PF: predicated region fallthrough
CT: control target
= control target key end

     0   :  { %8 = vsyncpa [#allocation3], 0  ;;  %s219_s0 = inlined_call_operand.hbm [shape: f32[8,16], index: 0, kind: input, shape index: {}]   ;;  %s220_s1 = inlined_call_operand.hbm [shape: f32[16,64], index: 1, kind: input, shape index: {}]   ;;  %s221_s2 = inlined_call_operand.vmem [shape: f32[1,64], index: 2, kind: input, shape index: {}]   ;;  %s222_s3 = inlined_call_operand.hbm [shape: f32[8,64], index: 3, kind: output, shape index: {}]  }
   0x1   :  { %9 = vsyncpa [#allocation6], 0 }
   0x2   :  { %10 = vsyncpa [#allocation4], 0  ;;  %s16_s14 = sshll.u32 %s219_s0, 4  ;;  %s182_s15 = smov [#allocation2]   ;;  %s17_s14 = int_to_ptr.hbm [resolvable:$true] %s16_s14 }
   0x3   :  { %s18_s16 = sshll.u32 %s182_s15, 4  ;;  %s26_s19 = sshll.u32 %s220_s1, 4  ;;  %s19_s16 = int_to_ptr.vmem [resolvable:$true] %s18_s16  ;;  %s27_s19 = int_to_ptr.hbm [resolvable:$true] %s26_s19 }
   0x4   :  { %21 = dma.hbm_to_vmem [thread:$0]  %s17_s14, 128, %s19_s16, [#allocation3]  }
   0x5   :  { %s183_s20 = smov [#allocation5]   ;;  %s184_s22 = smov 128  }
   0x6   :  { %s28_s21 = sshll.u32 %s183_s20, 4  ;;  %s185_s23 = smov 8   ;;  %s29_s21 = int_to_ptr.vmem [resolvable:$true] %s28_s21 }
   0x7   :  { %34 = dma.hbm_to_vmem [thread:$0]  %s27_s19, 256, %s29_s21, [#allocation6], %s184_s22, %s184_s22, %s185_s23  }
   0x8   :  { %176 = dma.done.wait [#allocation3], 128  }
   0x9   :  { %177 = vsyncadd [#allocation3], 4294967168 }
   0xa   :  { %178 = dma.done.wait [#allocation6], 256  }
   0xb   :  { %179 = vsyncadd [#allocation6], 4294967040  ;;  %v47_v0 = vld [vmem:[#allocation5 + $0x8] sm:$0xff]  ;;  %v46_v1 = vld [vmem:[#allocation5] sm:$0xff]  ;;  %vm52_vm0 = vcmask 130048   ;;  %s186_s24 = smov [#allocation7]  }
   0xc   :  { %70 = vmatpush.msra.mxu0 %v47_v0  ;;  %v45_v2 = vld [vmem:[#allocation2] sm:$0xff]  ;;  %s84_s25 = sshll.u32 %s186_s24, 4  ;;  %s86_s28 = sshll.u32 %s222_s3, 4  ;;  %vm77_vm1 = vcmask 523264   ;;  %s85_s25 = int_to_ptr.vmem [resolvable:$true] %s84_s25  ;;  %s87_s28 = int_to_ptr.hbm [resolvable:$true] %s86_s28 }
   0xd   :  { %v103_v3 = vld [vmem:[%s221_s2] ss:$0 sm:$0xff] }
   0xe   :  { %71 = vmatpush.msra.mxu0 %v46_v1 }
   0xf   :  { %97 = vmatmul.msk.f32.vlgmr.msra.gmra.mxu0 %vm52_vm0, %v45_v2 }
  0x8c   :  { %v73_v4 = vpop.f32.mrf.mxu0 }
  0x8d   :  { %v74_v5 = vadd.f32 %v103_v3, %v73_v4 }
  0x8f   :  { %v76_v6 = vmax.f32 %v74_v5, 0.0 }
  0x91   :  { %78 = vst.msk [vmem:[#allocation7] sm:$0xff] %vm77_vm1, %v76_v6 }
  0x92   :  { %89 = dma.vmem_to_hbm [thread:$0]  %s85_s25, 128, %s87_s28, [#allocation4]  }
  0x93   :  { %180 = dma.done.wait [#allocation4], 128  }
  0x94   :  { %181 = vsyncadd [#allocation4], 4294967168 }
  0x95   :  { %94 = vsyncpa [#allocation3], 1 }
  0x96   :  { %95 = vsyncpa [#allocation6], 1 }
  0x97   :  { %96 = vsyncpa [#allocation4], 1 }

</bundles_post_ra>
